<compile_context>
chip_gen: v7x
topology: tpu7x:2x2x1
jax: 0.10.0
libtpu: 0.0.40
codegen_flags: <defaults>
</compile_context>

<pallas_src>
import functools

import jax
import jax.numpy as jnp
from jax.experimental import pallas as pl
from jax.experimental.pallas import tpu as pltpu


def _block_kernel(x_ref, w1_ref, b1_ref, w2_ref, b2_ref, w3_ref, b3_ref, o_ref):
    # Fused MLP hot path: matmuls on the MXU (bf16 operands, fp32 accumulate),
    # bias-add / ReLU in fp32 on the VPU.  x arrives fp32 and is cast here so
    # the HBM stream for x is 4B/elem read exactly once (no wrapper cast pass).
    x = x_ref[...].astype(jnp.bfloat16)
    h = jnp.dot(x, w1_ref[...], preferred_element_type=jnp.float32)
    h = jnp.maximum(h + b1_ref[...], 0.0)
    h = jnp.dot(h.astype(jnp.bfloat16), w2_ref[...],
                preferred_element_type=jnp.float32)
    h = jnp.maximum(h + b2_ref[...], 0.0)
    o = jnp.dot(h.astype(jnp.bfloat16), w3_ref[...],
                preferred_element_type=jnp.float32) + b3_ref[...]
    o_ref[...] = o.astype(o_ref.dtype)


def _round_up(x, m):
    return ((x + m - 1) // m) * m


def _cdiv(a, b):
    return (a + b - 1) // b


def _choose_bm(B, block_m):
    """Batch-tile size.

    * B <= 128: single tile equal to the full batch (legal block layout since
      it equals the full array dim; no padding, no raggedness).
    * B  > 128: multiple of 128 (full MXU M pass on v5e), capped at block_m,
      and chosen so the grid has >= 2 steps -> DMA/compute overlap on all
      generations and both TensorCores busy on v7x via the "parallel" axis.
    """
    if B <= 128:
        return B
    bm = min(block_m, _round_up(_cdiv(B, 2), 128))
    return max(bm, 128)


@functools.partial(jax.jit, static_argnames=("block_m",))
def nbeats_block_forward(x, w1, b1, w2, b2, w3, b3, *, block_m=512):
    """n-BEATS Block forward pass via a fused Pallas kernel.

    x:  (B, input_dim * parameter_dim)  float32
    wi: (in_i, out_i) float32, bi: (1, out_i) float32
    returns (B, input_dim + output_dim) float32
    """
    B, F = x.shape
    H = w1.shape[1]
    O = w3.shape[1]
    O_pad = _round_up(O, 128)   # lane-dense output slab -> unmasked vst

    # Weights -> bf16 for the MXU (tiny, VMEM-resident for the whole grid).
    # w3/b3 are zero-padded along the output dim so the padded lanes are 0.
    w1b = w1.astype(jnp.bfloat16)
    w2b = w2.astype(jnp.bfloat16)
    w3b = jnp.pad(w3, ((0, 0), (0, O_pad - O))).astype(jnp.bfloat16)
    b3p = jnp.pad(b3, ((0, 0), (0, O_pad - O)))

    bm = _choose_bm(B, block_m)
    grid = (_cdiv(B, bm),)   # ragged last tile handled by Pallas (clipped store)

    flops = 2 * B * (F * H + H * H + H * O_pad)
    bytes_accessed = (
        x.size * 4                                # fp32 x read (single pass)
        + (w1b.size + w2b.size + w3b.size) * 2    # bf16 weights
        + (b1.size + b2.size + b3p.size) * 4      # fp32 biases
        + B * O_pad * 4                           # fp32 output write
    )

    out_padded = pl.pallas_call(
        _block_kernel,
        out_shape=jax.ShapeDtypeStruct((B, O_pad), x.dtype),
        grid_spec=pltpu.PrefetchScalarGridSpec(
            num_scalar_prefetch=0,
            grid=grid,
            in_specs=[
                pl.BlockSpec((bm, F), lambda i: (i, 0)),      # x tile (fp32)
                pl.BlockSpec((F, H), lambda i: (0, 0)),       # w1 (VMEM-resident)
                pl.BlockSpec((1, H), lambda i: (0, 0)),       # b1
                pl.BlockSpec((H, H), lambda i: (0, 0)),       # w2
                pl.BlockSpec((1, H), lambda i: (0, 0)),       # b2
                pl.BlockSpec((H, O_pad), lambda i: (0, 0)),   # w3 (lane-padded)
                pl.BlockSpec((1, O_pad), lambda i: (0, 0)),   # b3 (lane-padded)
            ],
            out_specs=pl.BlockSpec((bm, O_pad), lambda i: (i, 0)),
        ),
        compiler_params=pltpu.CompilerParams(
            dimension_semantics=("parallel",),   # batch axis -> megacore on v7x
            vmem_limit_bytes=32 * 1024 * 1024,
        ),
        cost_estimate=pl.CostEstimate(
            flops=flops, transcendentals=0, bytes_accessed=bytes_accessed),
    )(x, w1b, b1, w2b, b2, w3b, b3p)

    # Consumers that can tolerate the padded slab should skip this slice.
    return out_padded[:, :O]


# TODO(synk): for a full n-BEATS stack, fuse multiple Blocks (and the
# backcast/forecast subtraction) into one pallas_call with all blocks' weights
# VMEM-resident and activations carried in VMEM scratch; out of scope for this
# single-Block module.


def init_block_params(key, input_dim=24, parameter_dim=12, output_dim=6,
                      amount_fc=3, hidden_dim=128):
    """Deterministic params matching the PyTorch module's shapes.

    PyTorch Linear weight is (out, in); we store the transpose (in, out).
    Uses uniform(-1/sqrt(fan_in), 1/sqrt(fan_in)) like nn.Linear's default.
    """
    assert amount_fc == 3, "this script instantiates the default amount_fc=3"
    in_feat = input_dim * parameter_dim
    out_feat = input_dim + output_dim
    dims = [(in_feat, hidden_dim), (hidden_dim, hidden_dim), (hidden_dim, out_feat)]
    params = []
    keys = jax.random.split(key, 2 * len(dims))
    for idx, (fan_in, fan_out) in enumerate(dims):
        bound = 1.0 / jnp.sqrt(jnp.float32(fan_in))
        w = jax.random.uniform(keys[2 * idx], (fan_in, fan_out),
                               minval=-bound, maxval=bound, dtype=jnp.float32)
        b = jax.random.uniform(keys[2 * idx + 1], (1, fan_out),
                               minval=-bound, maxval=bound, dtype=jnp.float32)
        params += [w, b]
    return tuple(params)


def reference_forward(x, w1, b1, w2, b2, w3, b3):
    """fp32-accumulating reference (operand dtypes are whatever is passed in)."""
    h = jnp.maximum(jnp.dot(x, w1, preferred_element_type=jnp.float32) + b1, 0.0)
    h = h.astype(w2.dtype)
    h = jnp.maximum(jnp.dot(h, w2, preferred_element_type=jnp.float32) + b2, 0.0)
    h = h.astype(w3.dtype)
    return jnp.dot(h, w3, preferred_element_type=jnp.float32) + b3


if __name__ == "__main__":
    # Small shapes consistent with the module defaults.
    input_dim, parameter_dim, output_dim, hidden_dim = 24, 12, 6, 128
    batch = 8

    key = jax.random.PRNGKey(0)
    kx, kp = jax.random.split(key)
    x = jax.random.normal(kx, (batch, input_dim * parameter_dim), dtype=jnp.float32)
    w1, b1, w2, b2, w3, b3 = init_block_params(
        kp, input_dim, parameter_dim, output_dim, amount_fc=3, hidden_dim=hidden_dim)

    out = nbeats_block_forward(x, w1, b1, w2, b2, w3, b3)
    out = jax.block_until_ready(out)
    assert out.shape == (batch, input_dim + output_dim)

    # Tight check against a reference that mirrors the kernel's bf16-operand /
    # fp32-accumulate numerics.
    ref_bf16 = reference_forward(
        x.astype(jnp.bfloat16), w1.astype(jnp.bfloat16), b1,
        w2.astype(jnp.bfloat16), b2, w3.astype(jnp.bfloat16), b3)
    assert jnp.allclose(out, ref_bf16, atol=2e-3, rtol=2e-3), \
        "mismatch vs bf16-mirrored reference"

    # Loose sanity check against the pure-fp32 reference (PyTorch semantics).
    ref_f32 = reference_forward(x, w1, b1, w2, b2, w3, b3)
    assert jnp.allclose(out, ref_f32, atol=5e-2, rtol=5e-2), \
        "mismatch vs fp32 reference"

    print("KERNEL_OK")
</pallas_src>

<mosaic_0001>
module attributes {stable_mosaic.version = 11 : i64} {
  func.func @_block_kernel(%arg0: i32, %arg1: memref<8x288xf32, #tpu.memory_space<vmem>>, %arg2: memref<288x128xbf16, #tpu.memory_space<vmem>>, %arg3: memref<1x128xf32, #tpu.memory_space<vmem>>, %arg4: memref<128x128xbf16, #tpu.memory_space<vmem>>, %arg5: memref<1x128xf32, #tpu.memory_space<vmem>>, %arg6: memref<128x128xbf16, #tpu.memory_space<vmem>>, %arg7: memref<1x128xf32, #tpu.memory_space<vmem>>, %arg8: memref<8x128xf32, #tpu.memory_space<vmem>>) attributes {dimension_semantics = [#tpu.dimension_semantics<parallel>], iteration_bounds = array<i64: 1>, scalar_prefetch = 0 : i64, scratch_operands = 0 : i64, tpu.core_type = #tpu.core_type<tc>, window_params = [{transform_indices = @transform_0, window_bounds = array<i64: 8, 288>}, {pipeline_mode = #tpu.pipeline_mode<synchronous>, transform_indices = @transform_1, window_bounds = array<i64: 288, 128>}, {pipeline_mode = #tpu.pipeline_mode<synchronous>, transform_indices = @transform_2, window_bounds = array<i64: 1, 128>}, {pipeline_mode = #tpu.pipeline_mode<synchronous>, transform_indices = @transform_3, window_bounds = array<i64: 128, 128>}, {pipeline_mode = #tpu.pipeline_mode<synchronous>, transform_indices = @transform_4, window_bounds = array<i64: 1, 128>}, {pipeline_mode = #tpu.pipeline_mode<synchronous>, transform_indices = @transform_5, window_bounds = array<i64: 128, 128>}, {pipeline_mode = #tpu.pipeline_mode<synchronous>, transform_indices = @transform_6, window_bounds = array<i64: 1, 128>}, {transform_indices = @transform_7, window_bounds = array<i64: 8, 128>}]} {
    %c0 = arith.constant 0 : index
    %c0_0 = arith.constant 0 : index
    %0 = vector.load %arg1[%c0, %c0_0] : memref<8x288xf32, #tpu.memory_space<vmem>>, vector<8x288xf32>
    %1 = arith.truncf %0 : vector<8x288xf32> to vector<8x288xbf16>
    %c0_1 = arith.constant 0 : index
    %c0_2 = arith.constant 0 : index
    %2 = vector.load %arg2[%c0_1, %c0_2] : memref<288x128xbf16, #tpu.memory_space<vmem>>, vector<288x128xbf16>
    %cst = arith.constant dense<0.000000e+00> : vector<8x128xf32>
    %3 = tpu.matmul %1, %2, %cst {dimension_numbers = #tpu.dot_dimension_numbers<[1], [0], [0], [1], [0, 0, 1, 1], [], []>} : vector<8x288xbf16>, vector<288x128xbf16>, vector<8x128xf32> -> vector<8x128xf32>
    %c0_3 = arith.constant 0 : index
    %c0_4 = arith.constant 0 : index
    %4 = vector.load %arg3[%c0_3, %c0_4] : memref<1x128xf32, #tpu.memory_space<vmem>>, vector<1x128xf32>
    %5 = vector.broadcast %4 : vector<1x128xf32> to vector<8x128xf32>
    %6 = arith.addf %3, %5 : vector<8x128xf32>
    %cst_5 = arith.constant 0.000000e+00 : f32
    %7 = vector.broadcast %cst_5 : f32 to vector<8x128xf32>
    %8 = arith.maximumf %6, %7 : vector<8x128xf32>
    %9 = arith.truncf %8 : vector<8x128xf32> to vector<8x128xbf16>
    %c0_6 = arith.constant 0 : index
    %c0_7 = arith.constant 0 : index
    %10 = vector.load %arg4[%c0_6, %c0_7] : memref<128x128xbf16, #tpu.memory_space<vmem>>, vector<128x128xbf16>
    %cst_8 = arith.constant dense<0.000000e+00> : vector<8x128xf32>
    %11 = tpu.matmul %9, %10, %cst_8 {dimension_numbers = #tpu.dot_dimension_numbers<[1], [0], [0], [1], [0, 0, 1, 1], [], []>} : vector<8x128xbf16>, vector<128x128xbf16>, vector<8x128xf32> -> vector<8x128xf32>
    %c0_9 = arith.constant 0 : index
    %c0_10 = arith.constant 0 : index
    %12 = vector.load %arg5[%c0_9, %c0_10] : memref<1x128xf32, #tpu.memory_space<vmem>>, vector<1x128xf32>
    %13 = vector.broadcast %12 : vector<1x128xf32> to vector<8x128xf32>
    %14 = arith.addf %11, %13 : vector<8x128xf32>
    %cst_11 = arith.constant 0.000000e+00 : f32
    %15 = vector.broadcast %cst_11 : f32 to vector<8x128xf32>
    %16 = arith.maximumf %14, %15 : vector<8x128xf32>
    %17 = arith.truncf %16 : vector<8x128xf32> to vector<8x128xbf16>
    %c0_12 = arith.constant 0 : index
    %c0_13 = arith.constant 0 : index
    %18 = vector.load %arg6[%c0_12, %c0_13] : memref<128x128xbf16, #tpu.memory_space<vmem>>, vector<128x128xbf16>
    %cst_14 = arith.constant dense<0.000000e+00> : vector<8x128xf32>
    %19 = tpu.matmul %17, %18, %cst_14 {dimension_numbers = #tpu.dot_dimension_numbers<[1], [0], [0], [1], [0, 0, 1, 1], [], []>} : vector<8x128xbf16>, vector<128x128xbf16>, vector<8x128xf32> -> vector<8x128xf32>
    %c0_15 = arith.constant 0 : index
    %c0_16 = arith.constant 0 : index
    %20 = vector.load %arg7[%c0_15, %c0_16] : memref<1x128xf32, #tpu.memory_space<vmem>>, vector<1x128xf32>
    %21 = vector.broadcast %20 : vector<1x128xf32> to vector<8x128xf32>
    %22 = arith.addf %19, %21 : vector<8x128xf32>
    %c0_17 = arith.constant 0 : index
    %c0_18 = arith.constant 0 : index
    %23 = vector.load %arg8[%c0_17, %c0_18] : memref<8x128xf32, #tpu.memory_space<vmem>>, vector<8x128xf32>
    tpu.vector_store %arg8[%c0_17, %c0_18], %22 {strides = array<i32>} : memref<8x128xf32, #tpu.memory_space<vmem>>, vector<8x128xf32>,
    return
  }
  func.func @transform_0(%arg0: i32) -> (i32, i32) {
    %c0_i32 = arith.constant 0 : i32
    %c0_i32_0 = arith.constant 0 : i32
    return %arg0, %c0_i32 : i32, i32
  }
  func.func @transform_1(%arg0: i32) -> (i32, i32) {
    %c0_i32 = arith.constant 0 : i32
    %c0_i32_0 = arith.constant 0 : i32
    %c0_i32_1 = arith.constant 0 : i32
    return %c0_i32, %c0_i32_0 : i32, i32
  }
  func.func @transform_2(%arg0: i32) -> (i32, i32) {
    %c0_i32 = arith.constant 0 : i32
    %c0_i32_0 = arith.constant 0 : i32
    %c0_i32_1 = arith.constant 0 : i32
    return %c0_i32, %c0_i32_0 : i32, i32
  }
  func.func @transform_3(%arg0: i32) -> (i32, i32) {
    %c0_i32 = arith.constant 0 : i32
    %c0_i32_0 = arith.constant 0 : i32
    %c0_i32_1 = arith.constant 0 : i32
    return %c0_i32, %c0_i32_0 : i32, i32
  }
  func.func @transform_4(%arg0: i32) -> (i32, i32) {
    %c0_i32 = arith.constant 0 : i32
    %c0_i32_0 = arith.constant 0 : i32
    %c0_i32_1 = arith.constant 0 : i32
    return %c0_i32, %c0_i32_0 : i32, i32
  }
  func.func @transform_5(%arg0: i32) -> (i32, i32) {
    %c0_i32 = arith.constant 0 : i32
    %c0_i32_0 = arith.constant 0 : i32
    %c0_i32_1 = arith.constant 0 : i32
    return %c0_i32, %c0_i32_0 : i32, i32
  }
  func.func @transform_6(%arg0: i32) -> (i32, i32) {
    %c0_i32 = arith.constant 0 : i32
    %c0_i32_0 = arith.constant 0 : i32
    %c0_i32_1 = arith.constant 0 : i32
    return %c0_i32, %c0_i32_0 : i32, i32
  }
  func.func @transform_7(%arg0: i32) -> (i32, i32) {
    %c0_i32 = arith.constant 0 : i32
    %c0_i32_0 = arith.constant 0 : i32
    return %arg0, %c0_i32 : i32, i32
  }
}

</mosaic_0001>

<bundles_post_ra>
// kernel: nbeats_block_forward.1
= control target key start
LH: loop header
LB: loop body
LE: loop exit
PB: predicated region body
PF: predicated region fallthrough
CT: control target
= control target key end

     0   :  { %v700_v2 = vmov 0.0   ;;  %vm701_vm0 = vmmov 0   ;;  %vm185_vm1 = vcmask 261120   ;;  %s899_s0 = inlined_call_operand.vmem [shape: f32[8,288], index: 0, kind: input, shape index: {}]   ;;  %s900_s1 = inlined_call_operand.vmem [shape: bf16[288,128], index: 1, kind: input, shape index: {}]   ;;  %s901_s2 = inlined_call_operand.vmem [shape: f32[1,128], index: 2, kind: input, shape index: {}]   ;;  %s902_s3 = inlined_call_operand.vmem [shape: bf16[128,128], index: 3, kind: input, shape index: {}]   ;;  %s903_s4 = inlined_call_operand.vmem [shape: f32[1,128], index: 4, kind: input, shape index: {}]   ;;  %s904_s5 = inlined_call_operand.vmem [shape: bf16[128,128], index: 5, kind: input, shape index: {}]   ;;  %s905_s6 = inlined_call_operand.vmem [shape: f32[1,128], index: 6, kind: input, shape index: {}]   ;;  %s906_s7 = inlined_call_operand.hbm [shape: f32[8,128], index: 7, kind: output, shape index: {}]  }
   0x1   :  { %v642_v0 = vld [vmem:[%s900_s1 + $0x40] sm:$0xff]   ;;  %591 = vmatprep.subr.bf16.mxu1 %v700_v2  ;;  %v644_v3 = vld [vmem:[%s900_s1 + $0x48] sm:$0xff]   ;;  %595 = vmatprep.mubr.msk.bf16.mxu1 %vm701_vm0, %v700_v2  ;;  %v646_v5 = vld [vmem:[%s900_s1 + $0x50] sm:$0xff]  }
   0x2   :  { %v643_v1 = vld [vmem:[%s900_s1] sm:$0xff]   ;;  %548 = vmatprep.subr.bf16.mxu0 %v642_v0  ;;  %v645_v4 = vld [vmem:[%s900_s1 + $0x8] sm:$0xff]   ;;  %v647_v6 = vld [vmem:[%s900_s1 + $0x10] sm:$0xff]  }
   0x3   :  { %549 = vmatpush3.bf16.msra.mxu0 %v643_v1  ;;  %v648_v7 = vld [vmem:[%s900_s1 + $0x58] sm:$0xff]   ;;  %v650_v9 = vld [vmem:[%s900_s1 + $0x60] sm:$0xff]   ;;  %v652_v12 = vld [vmem:[%s900_s1 + $0x68] sm:$0xff]  }
   0x4   :  { %550 = vmatprep.subr.bf16.mxu0 %v644_v3  ;;  %v649_v8 = vld [vmem:[%s900_s1 + $0x18] sm:$0xff]   ;;  %v656_v10 = vld [vmem:[%s900_s1 + $0x80] sm:$0xff]   ;;  %v29_v13 = vld [vmem:[%s899_s0 + $0x8] sm:$0xff] }
   0x5   :  { %v651_v11 = vld [vmem:[%s900_s1 + $0x20] sm:$0xff]   ;;  %592 = vmatpush3.bf16.msra.mxu1 %v656_v10  ;;  %v32_v14 = vpack.c.bf16 %v29_v13, %v29_v13  ;;  %v659_v15 = vld [vmem:[%s900_s1 + $0x88] sm:$0xff]   ;;  %v30_v16 = vld [vmem:[%s899_s0 + $0x10] sm:$0xff] }
   0x6   :  { %593 = vmatprep.subr.bf16.mxu1 %v700_v2  ;;  %v653_v17 = vld [vmem:[%s900_s1 + $0x28] sm:$0xff]   ;;  %v654_v18 = vld [vmem:[%s900_s1 + $0x70] sm:$0xff]   ;;  %v33_v19 = vpack.c.bf16 %v30_v16, %v30_v16  ;;  %v660_v21 = vld [vmem:[%s902_s3] sm:$0xff]  }
   0x7   :  { %551 = vmatpush3.bf16.msra.mxu0 %v645_v4  ;;  %221 = vmatprep.mubr.bf16.mxu0 %v32_v14  ;;  %v655_v20 = vld [vmem:[%s900_s1 + $0x30] sm:$0xff]   ;;  %v657_v22 = vld [vmem:[%s900_s1 + $0x78] sm:$0xff]   ;;  %v661_v23 = vld [vmem:[%s902_s3 + $0x8] sm:$0xff]  }
   0x8   :  { %552 = vmatprep.subr.bf16.mxu0 %v646_v5  ;;  %v658_v24 = vld [vmem:[%s900_s1 + $0x38] sm:$0xff]   ;;  %v28_v25 = vld [vmem:[%s899_s0] sm:$0xff]  ;;  %v662_v26 = vld [vmem:[%s902_s3 + $0x10] sm:$0xff]  }
   0x9   :  { %594 = vmatpush3.bf16.msra.mxu1 %v659_v15  ;;  %v31_v27 = vpack.c.bf16 %v28_v25, %v28_v25 }
   0xa   :  { %599 = vmatprep.subr.bf16.mxu1 %v700_v2 }
   0xb   :  { %553 = vmatpush3.bf16.msra.mxu0 %v647_v6 }
   0xc   :  { %554 = vmatprep.subr.bf16.mxu0 %v648_v7  ;;  %596 = vmatmul.mubr.msk.bf16.vlgmr.msra.gmra.mrb[0].mxu1 %vm185_vm1, %v33_v19 }
   0xd   :  { %600 = vmatpush3.bf16.msra.mxu1 %v660_v21  ;;  %615 = vmatprep.mubr.msk.bf16.mxu1 %vm701_vm0, %v700_v2 }
   0xe   :  { %601 = vmatprep.subr.bf16.mxu1 %v700_v2 }
   0xf   :  { %555 = vmatpush3.bf16.msra.mxu0 %v649_v8 }
  0x10   :  { %556 = vmatprep.subr.bf16.mxu0 %v650_v9 }
  0x11   :  { %602 = vmatpush3.bf16.msra.mxu1 %v661_v23 }
  0x12   :  { %603 = vmatprep.subr.bf16.mxu1 %v700_v2 }
  0x13   :  { %557 = vmatpush3.bf16.msra.mxu0 %v651_v11 }
  0x14   :  { %558 = vmatprep.subr.bf16.mxu0 %v652_v12 }
  0x17   :  { %559 = vmatpush3.bf16.msra.mxu0 %v653_v17 }
  0x18   :  { %560 = vmatprep.subr.bf16.mxu0 %v654_v18 }
  0x1b   :  { %561 = vmatpush3.bf16.msra.mxu0 %v655_v20 }
  0x1c   :  { %562 = vmatprep.subr.bf16.mxu0 %v657_v22 }
  0x1f   :  { %563 = vmatpush3.bf16.msra.mxu0 %v658_v24 }
  0x20   :  { %12 = vsyncpa [#allocation3], 0  ;;  %619 = vmatprep.subr.bf16.mxu0 %v700_v2  ;;  %604 = vmatpush3.bf16.msra.mxu1 %v662_v26  ;;  %v663_v28 = vld [vmem:[%s902_s3 + $0x18] sm:$0xff]   ;;  %v664_v29 = vld [vmem:[%s902_s3 + $0x20] sm:$0xff]   ;;  %s702_s29 = smov [#allocation2]  }
  0x21   :  { %605 = vmatprep.subr.bf16.mxu1 %v700_v2  ;;  %v665_v30 = vld [vmem:[%s902_s3 + $0x28] sm:$0xff]   ;;  %v666_v31 = vld [vmem:[%s902_s3 + $0x30] sm:$0xff]   ;;  %v667_v32 = vld [vmem:[%s902_s3 + $0x38] sm:$0xff]   ;;  %s502_s30 = sshll.u32 %s702_s29, 4  ;;  %s503_s30 = int_to_ptr.vmem [resolvable:$true] %s502_s30 }
  0x22   :  { %222 = vmatmul.mubr.bf16.vlgmr.msra.gmra.mrb[0].mxu0 %v31_v27  ;;  %v668_v33 = vld [vmem:[%s904_s5] sm:$0xff]   ;;  %v669_v34 = vld [vmem:[%s904_s5 + $0x8] sm:$0xff]   ;;  %v670_v35 = vld [vmem:[%s904_s5 + $0x10] sm:$0xff]   ;;  %p681_p1 = scmp.lt.s32.totalorder %s503_s30, %s503_s30 }
  0x23   :  { %635 = vmatprep.mubr.msk.bf16.mxu0 %vm701_vm0, %v700_v2  ;;  %620 = vmatpush3.bf16.msra.mxu0 %v668_v33  ;;  %v671_v36 = vld [vmem:[%s904_s5 + $0x18] sm:$0xff]   ;;  %v672_v37 = vld [vmem:[%s904_s5 + $0x20] sm:$0xff]   ;;  %v673_v38 = vld [vmem:[%s904_s5 + $0x28] sm:$0xff]  }
  0x24   :  { %606 = vmatpush3.bf16.msra.mxu1 %v663_v28  ;;  %621 = vmatprep.subr.bf16.mxu0 %v700_v2  ;;  %v510_v45 = vld [vmem:[%s901_s2] ss:$0 sm:$0xff]  ;;  %v674_v53 = vld [vmem:[%s904_s5 + $0x30] sm:$0xff]   ;;  %v675_v54 = vld [vmem:[%s904_s5 + $0x38] sm:$0xff]  }
  0x25   :  { %607 = vmatprep.subr.bf16.mxu1 %v700_v2  ;;  %v530_v55 = vld [vmem:[%s903_s4] ss:$0 sm:$0xff]  ;;  %s676_s4 = scalar_lea.vmem %s503_s30, 128 }
  0x26   :  { %v539_v63 = vld [vmem:[%s905_s6] ss:$0 sm:$0xff]  ;;  %p677_p0 = scmp.ne.s32.totalorder %s503_s30, %s676_s4  ;;  %p682_p2 = scmp.lt.s32.totalorder %s676_s4, %s676_s4 }
  0x27   :  { %622 = vmatpush3.bf16.msra.mxu0 %v669_v34 }
  0x28   :  { %608 = vmatpush3.bf16.msra.mxu1 %v664_v29  ;;  %623 = vmatprep.subr.bf16.mxu0 %v700_v2  ;;  %p683_p3 = por %p682_p2, %p681_p1 }
  0x29   :  { %609 = vmatprep.subr.bf16.mxu1 %v700_v2 }
  0x2a   :  { %p684_p4 = pnand %p683_p3, %p677_p0 }
  0x2b   :  { %624 = vmatpush3.bf16.msra.mxu0 %v670_v35 }
  0x2c   :  { %610 = vmatpush3.bf16.msra.mxu1 %v665_v30  ;;  %625 = vmatprep.subr.bf16.mxu0 %v700_v2 }
  0x2d   :  { %611 = vmatprep.subr.bf16.mxu1 %v700_v2 }
  0x2f   :  { %626 = vmatpush3.bf16.msra.mxu0 %v671_v36 }
  0x30   :  { %612 = vmatpush3.bf16.msra.mxu1 %v666_v31  ;;  %627 = vmatprep.subr.bf16.mxu0 %v700_v2 }
  0x31   :  { %613 = vmatprep.subr.bf16.mxu1 %v700_v2 }
  0x33   :  { %628 = vmatpush3.bf16.msra.mxu0 %v672_v37 }
  0x34   :  { %614 = vmatpush3.bf16.msra.mxu1 %v667_v32  ;;  %629 = vmatprep.subr.bf16.mxu0 %v700_v2 }
  0x37   :  { %630 = vmatpush3.bf16.msra.mxu0 %v673_v38 }
  0x38   :  { %631 = vmatprep.subr.bf16.mxu0 %v700_v2 }
  0x3b   :  { %632 = vmatpush3.bf16.msra.mxu0 %v674_v53 }
  0x3c   :  { %633 = vmatprep.subr.bf16.mxu0 %v700_v2 }
  0x3f   :  { %634 = vmatpush3.bf16.msra.mxu0 %v675_v54 }
  0xdf   :  { %v263_v39 = vpop.f32.mrb[0].mxu1 }
  0xe0   :  { %v597_v40 = vpop.f32.mrb[1].mxu1 }
  0xe1   :  { %v266_v41 = vpop.f32.mrb[2].mxu1 }
  0xe2   :  { %v598_v42 = vpop.f32.mrb[3].mxu1 }
  0xf5   :  { %v564_v43 = vpop.f32.mrb[0].mxu0 }
  0xf6   :  { %v565_v44 = vpop.f32.mrb[1].mxu0 }
  0xf7   :  { %v566_v46 = vadd.f32 %v565_v44, %v564_v43  ;;  %v567_v47 = vpop.f32.mrb[2].mxu0 }
  0xf8   :  { %v568_v48 = vpop.f32.mrb[3].mxu0 }
  0xf9   :  { %v224_v49 = vadd.f32 %v566_v46, %v510_v45 }
  0xfb   :  { %v264_v50 = vadd.f32 %v263_v39, %v224_v49 }
  0xfd   :  { %v269_v51 = vmax.f32 %v264_v50, 0.0 }
  0xff   :  { %v270_v52 = vpack.c.bf16 %v269_v51, %v269_v51 }
 0x101   :  { %616 = vmatmul.mubr.bf16.vlgmr.msra.gmra.mrb[4].mxu1 %v270_v52 }
 0x1d4   :  { %v376_v56 = vpop.f32.mrb[4].mxu1 }
 0x1d5   :  { %v377_v57 = vadd.f32 %v530_v55, %v376_v56  ;;  %v617_v58 = vpop.f32.mrb[5].mxu1 }
 0x1d6   :  { %v379_v59 = vpop.f32.mrb[6].mxu1 }
 0x1d7   :  { %v382_v60 = vmax.f32 %v377_v57, 0.0  ;;  %v618_v61 = vpop.f32.mrb[7].mxu1 }
 0x1d9   :  { %v383_v62 = vpack.c.bf16 %v382_v60, %v382_v60 }
 0x1db   :  { %636 = vmatmul.mubr.bf16.vlgmr.msra.gmra.mrb[4].mxu0 %v383_v62 }
 0x2ae   :  { %v489_v0 = vpop.f32.mrb[4].mxu0 }
 0x2af   :  { %v490_v1 = vadd.f32 %v539_v63, %v489_v0  ;;  %v637_v2 = vpop.f32.mrb[5].mxu0 }
 0x2b0   :  { %v492_v3 = vpop.f32.mrb[6].mxu0 }
 0x2b1   :  { %495 = vst [vmem:[#allocation2] sm:$0xff] %v490_v1  ;;  %v638_v4 = vpop.f32.mrb[7].mxu0 }
 0x2b2   :  { %687 = shalt.err (!%p684_p4)
}
 0x2b3   :  { %s688_s6 = scalar_lea.hbm %s906_s7, 128 }
 0x2b4   :  { %p689_p5 = scmp.ne.s32.totalorder %s906_s7, %s688_s6  ;;  %p692_p6 = scmp.lt.u32.totalorder %s688_s6, %s906_s7 }
 0x2b6   :  { %p694_p7 = pnand %p692_p6, %p689_p5 }
 0x2b8   :  { %697 = shalt.err (!%p694_p7)
}
 0x2b9   :  { %505 = dma.vmem_to_hbm [thread:$0]  %s503_s30, 128, %s906_s7, [#allocation3]  }
 0x2ba   :  { %698 = dma.done.wait [#allocation3], 128  }
 0x2bb   :  { %699 = vsyncadd [#allocation3], 4294967168 }
 0x2bc   :  { %509 = vsyncpa [#allocation3], 1 }

</bundles_post_ra>
